<compile_context>
chip_gen: v6e
topology: v6e:2x2x1
jax: 0.10.0
libtpu: 0.0.40
codegen_flags: <defaults>
</compile_context>

<pallas_src>
import functools
import math

import jax
import jax.numpy as jnp
from jax.experimental import pallas as pl
from jax.experimental.pallas import tpu as pltpu


def _round_up(x, m):
    return ((x + m - 1) // m) * m


def _cdiv(a, b):
    return (a + b - 1) // b


def _tpu_params():
    """(num_tensorcores, x-chunk single-buffer budget, scoped vmem limit)."""
    try:
        kind = jax.devices()[0].device_kind.lower()
    except Exception:
        kind = ""
    is_v7 = ("v7" in kind) or ("7x" in kind)
    if is_v7:
        num_tc, tile_budget, vmem_limit = 2, 8 << 20, 40 << 20
    else:
        num_tc, tile_budget, vmem_limit = 1, 16 << 20, 64 << 20
    # Clamp against reported physical VMEM if the query is available.
    try:
        info = pltpu.get_tpu_info()
        cap = None
        for attr in ("vmem_capacity_bytes", "vmem_bytes"):
            cap = getattr(info, attr, None)
            if cap:
                break
        if cap:
            vmem_limit = min(vmem_limit, int(cap) * 3 // 4)
    except Exception:
        pass
    return num_tc, tile_budget, vmem_limit


def _pick_hw_chunk(hw, rows_tile, itemsize, budget_bytes):
    """Lane chunk: multiple of 128 so one (rows_tile, t_hw) block fits the
    single-buffer budget (the pipeline double-buffers it).  Returns
    (chunk, padded_hw)."""
    hw128 = _round_up(hw, 128)
    cap = max(128, (budget_bytes // max(1, rows_tile * itemsize)) // 128 * 128)
    cap = min(cap, 256 * 128)      # bound the unrolled lane-group add loop
    if hw128 <= cap:
        return hw128, hw128
    n = _cdiv(hw128, cap)
    t = _round_up(_cdiv(hw128, n), 128)
    return t, t * n


# ----------------------------------------------------------------------------
# Fused kernel: GAP (chunked, lane-dense f32 accumulation) + linear + zeros
# ----------------------------------------------------------------------------
def _gap_linear_zeros_kernel(x_ref, w_ref, emb_ref, logits_ref, acc_ref, *,
                             inv_hw, channels):
    k = pl.program_id(1)

    @pl.when(k == 0)
    def _init():
        acc_ref[...] = jnp.zeros_like(acc_ref)

    # x_ref: (rows_tile, t_hw) with t_hw a multiple of 128.  Accumulate the
    # 128-lane groups with vreg-wise VPU adds (no per-chunk XLU reduce).
    n_groups = x_ref.shape[1] // 128
    s = x_ref[:, 0:128].astype(jnp.float32)
    for g in range(1, n_groups):
        s = s + x_ref[:, g * 128:(g + 1) * 128].astype(jnp.float32)
    acc_ref[...] += s

    @pl.when(k == pl.num_programs(1) - 1)
    def _finalize():
        rows = acc_ref.shape[0]
        bt = emb_ref.shape[0]                 # batch items in this tile
        # Single cross-lane reduce; the mean scale is folded in once.
        gap = jnp.sum(acc_ref[...], axis=-1, keepdims=True) * inv_hw  # (rows,1)
        # Per-row contribution: gap[r] * w[r mod C, :] (w_ref is the
        # row-replicated weight -> pure lane broadcast multiply).
        contrib = gap * w_ref[...].astype(jnp.float32)                # (rows,E')
        # Sum the C rows of each batch item with a tiny MXU dot against an
        # iota-built 0/1 selection mask (avoids a sublane->lane reshape).
        m = _cdiv(bt, 8) * 8
        r_idx = jax.lax.broadcasted_iota(jnp.int32, (m, rows), 1)
        b_idx = jax.lax.broadcasted_iota(jnp.int32, (m, rows), 0)
        start = b_idx * channels
        sel = jnp.logical_and(r_idx >= start, r_idx < start + channels)
        sel = sel.astype(jnp.float32)                                 # (m,rows)
        emb = jnp.dot(sel, contrib, preferred_element_type=jnp.float32)
        emb_ref[...] = emb[:bt, :].astype(emb_ref.dtype)
        logits_ref[...] = jnp.zeros(logits_ref.shape, logits_ref.dtype)


# ----------------------------------------------------------------------------
# DoNothing(backbone, num_classes).forward(inputs)
# ----------------------------------------------------------------------------
def do_nothing_forward(inputs, backbone_w, num_classes):
    # TODO(synk): the real backbone in backbone_apcnn.py is an arbitrary
    # injected nn.Module; it is synthesized deterministically here as
    # GAP + linear, and its unused x2/x3/x4 pyramid outputs are elided
    # (DoNothing.forward discards them).
    B, C, H, W = inputs.shape
    Cw, E = backbone_w.shape
    assert Cw == C
    hw = H * W
    out_dtype = jnp.result_type(inputs.dtype, backbone_w.dtype)

    num_tc, tile_budget, vmem_limit = _tpu_params()

    # Lane-dense padded output widths (no masked partial stores).
    e_pad = _round_up(E, 128)
    nc_pad = _round_up(num_classes, 128)

    # ---- Row packing: (B, C, H, W) -> (B*C, H*W); rows padded to a multiple
    # of 8 so every chunk fills full (8,128) vregs.
    unit_b = 8 // math.gcd(C, 8)          # batch items per 8-row multiple
    n_btiles = 1
    if num_tc >= 2 and B % (num_tc * 8) == 0:
        # Give each TensorCore a whole, 8-aligned batch tile (no padding).
        n_btiles = num_tc
        B_pad = B
    else:
        B_pad = _round_up(B, unit_b)
    tb_b = B_pad // n_btiles
    rows_pad = B_pad * C
    rows_tile = tb_b * C

    # ---- H*W chunking; zero padding is exact since inv_hw uses the true H*W.
    t_hw, hw_pad = _pick_hw_chunk(hw, rows_tile, inputs.dtype.itemsize,
                                  tile_budget)
    n_chunks = hw_pad // t_hw

    x2 = inputs.reshape(B * C, hw)
    if rows_pad != B * C or hw_pad != hw:
        x2 = jnp.pad(x2, ((0, rows_pad - B * C), (0, hw_pad - hw)))

    # Row-replicated, column-padded projection weight: w_rep[b*C + c] = w[c].
    w_p = backbone_w
    if e_pad != E:
        w_p = jnp.pad(w_p, ((0, 0), (0, e_pad - E)))
    w_rep = jnp.tile(w_p, (B_pad, 1))     # (rows_pad, e_pad)

    kernel = functools.partial(_gap_linear_zeros_kernel,
                               inv_hw=1.0 / hw, channels=C)

    emb_pad, logits_pad = pl.pallas_call(
        kernel,
        out_shape=(
            jax.ShapeDtypeStruct((B_pad, e_pad), out_dtype),
            jax.ShapeDtypeStruct((B_pad, nc_pad), out_dtype),
        ),
        grid_spec=pltpu.PrefetchScalarGridSpec(
            num_scalar_prefetch=0,
            grid=(n_btiles, n_chunks),
            in_specs=[
                pl.BlockSpec((rows_tile, t_hw), lambda r, k: (r, k)),
                pl.BlockSpec((rows_tile, e_pad), lambda r, k: (r, 0)),
            ],
            out_specs=(
                pl.BlockSpec((tb_b, e_pad), lambda r, k: (r, 0)),
                pl.BlockSpec((tb_b, nc_pad), lambda r, k: (r, 0)),
            ),
            scratch_shapes=[pltpu.VMEM((rows_tile, 128), jnp.float32)],
        ),
        compiler_params=pltpu.CompilerParams(
            dimension_semantics=("parallel", "arbitrary"),
            vmem_limit_bytes=vmem_limit,
        ),
    )(x2, w_rep)

    embedding = emb_pad[:B, :E]
    logits = logits_pad[:B, :num_classes]
    return embedding, logits


if __name__ == "__main__":
    key = jax.random.PRNGKey(0)
    kx, kw = jax.random.split(key)

    B, C, H, W = 2, 4, 16, 16
    E = 32
    num_classes = 10

    x = jax.random.normal(kx, (B, C, H, W), dtype=jnp.float32)
    backbone_w = jax.random.normal(kw, (C, E), dtype=jnp.float32) * 0.1

    emb, logits = do_nothing_forward(x, backbone_w, num_classes)
    emb = jax.block_until_ready(emb)
    logits = jax.block_until_ready(logits)

    # Pure-XLA reference for the synthesized backbone + DoNothing semantics.
    ref_emb = jnp.mean(x, axis=(2, 3)) @ backbone_w

    assert emb.shape == (B, E)
    assert logits.shape == (B, num_classes)
    assert logits.dtype == emb.dtype
    assert bool(jnp.all(logits == 0))
    assert bool(jnp.allclose(emb, ref_emb, atol=1e-4, rtol=1e-4))

    print("KERNEL_OK")
</pallas_src>

<mosaic_0001>
module attributes {stable_mosaic.version = 11 : i64} {
  func.func @_gap_linear_zeros_kernel(%arg0: i32, %arg1: i32, %arg2: memref<8x256xf32, #tpu.memory_space<vmem>>, %arg3: memref<8x128xf32, #tpu.memory_space<vmem>>, %arg4: memref<2x128xf32, #tpu.memory_space<vmem>>, %arg5: memref<2x128xf32, #tpu.memory_space<vmem>>, %arg6: memref<8x128xf32, #tpu.memory_space<vmem>>) attributes {dimension_semantics = [#tpu.dimension_semantics<parallel>, #tpu.dimension_semantics<arbitrary>], iteration_bounds = array<i64: 1, 1>, scalar_prefetch = 0 : i64, scratch_operands = 1 : i64, tpu.core_type = #tpu.core_type<tc>, window_params = [{transform_indices = @transform_0, window_bounds = array<i64: 8, 256>}, {transform_indices = @transform_1, window_bounds = array<i64: 8, 128>}, {transform_indices = @transform_2, window_bounds = array<i64: 2, 128>}, {transform_indices = @transform_3, window_bounds = array<i64: 2, 128>}]} {
    %c0_i32 = arith.constant 0 : i32
    %0 = arith.cmpi eq, %arg1, %c0_i32 : i32
    %1 = arith.extui %0 : i1 to i32
    %c0_i32_0 = arith.constant 0 : i32
    %2 = arith.cmpi ne, %1, %c0_i32_0 : i32
    scf.if %2 {
      %cst = arith.constant 0.000000e+00 : f32
      %12 = vector.broadcast %cst : f32 to vector<8x128xf32>
      %c0_9 = arith.constant 0 : index
      %c0_10 = arith.constant 0 : index
      %13 = vector.load %arg6[%c0_9, %c0_10] : memref<8x128xf32, #tpu.memory_space<vmem>>, vector<8x128xf32>
      tpu.vector_store %arg6[%c0_9, %c0_10], %12 {strides = array<i32>} : memref<8x128xf32, #tpu.memory_space<vmem>>, vector<8x128xf32>,
    } else {
    }
    %c0 = arith.constant 0 : index
    %c0_1 = arith.constant 0 : index
    %3 = vector.load %arg2[%c0, %c0_1] : memref<8x256xf32, #tpu.memory_space<vmem>>, vector<8x128xf32>
    %c0_2 = arith.constant 0 : index
    %c128 = arith.constant 128 : index
    %4 = vector.load %arg2[%c0_2, %c128] : memref<8x256xf32, #tpu.memory_space<vmem>>, vector<8x128xf32>
    %5 = arith.addf %3, %4 : vector<8x128xf32>
    %c0_3 = arith.constant 0 : index
    %c0_4 = arith.constant 0 : index
    %6 = vector.load %arg6[%c0_3, %c0_4] : memref<8x128xf32, #tpu.memory_space<vmem>>, vector<8x128xf32>
    %7 = arith.addf %6, %5 : vector<8x128xf32>
    %c0_5 = arith.constant 0 : index
    %c0_6 = arith.constant 0 : index
    %8 = vector.load %arg6[%c0_5, %c0_6] : memref<8x128xf32, #tpu.memory_space<vmem>>, vector<8x128xf32>
    tpu.vector_store %arg6[%c0_5, %c0_6], %7 {strides = array<i32>} : memref<8x128xf32, #tpu.memory_space<vmem>>, vector<8x128xf32>,
    %c0_i32_7 = arith.constant 0 : i32
    %9 = arith.cmpi eq, %arg1, %c0_i32_7 : i32
    %10 = arith.extui %9 : i1 to i32
    %c0_i32_8 = arith.constant 0 : i32
    %11 = arith.cmpi ne, %10, %c0_i32_8 : i32
    scf.if %11 {
      %c0_9 = arith.constant 0 : index
      %c0_10 = arith.constant 0 : index
      %12 = vector.load %arg6[%c0_9, %c0_10] : memref<8x128xf32, #tpu.memory_space<vmem>>, vector<8x128xf32>
      %cst = arith.constant dense<0.000000e+00> : vector<8xf32>
      %13 = vector.multi_reduction <add>, %12, %cst [1] : vector<8x128xf32> to vector<8xf32>
      %14 = vector.shape_cast %13 : vector<8xf32> to vector<8x1xf32>
      %cst_11 = arith.constant 3.906250e-03 : f32
      %15 = vector.broadcast %cst_11 : f32 to vector<8x1xf32>
      %16 = arith.mulf %14, %15 : vector<8x1xf32>
      %c0_12 = arith.constant 0 : index
      %c0_13 = arith.constant 0 : index
      %17 = vector.load %arg3[%c0_12, %c0_13] : memref<8x128xf32, #tpu.memory_space<vmem>>, vector<8x128xf32>
      %18 = vector.broadcast %16 : vector<8x1xf32> to vector<8x128xf32>
      %19 = arith.mulf %18, %17 : vector<8x128xf32>
      %20 = tpu.iota {dimensions = array<i32: 1>} : vector<8x8xi32>
      %21 = tpu.iota {dimensions = array<i32: 0>} : vector<8x8xi32>
      %c4_i32 = arith.constant 4 : i32
      %22 = vector.broadcast %c4_i32 : i32 to vector<8x8xi32>
      %23 = arith.muli %21, %22 : vector<8x8xi32>
      %24 = arith.cmpi sge, %20, %23 : vector<8x8xi32>
      %c4_i32_14 = arith.constant 4 : i32
      %25 = vector.broadcast %c4_i32_14 : i32 to vector<8x8xi32>
      %26 = arith.addi %23, %25 : vector<8x8xi32>
      %27 = arith.cmpi slt, %20, %26 : vector<8x8xi32>
      %28 = arith.andi %24, %27 : vector<8x8xi1>
      %29 = arith.extui %28 : vector<8x8xi1> to vector<8x8xi32>
      %30 = arith.sitofp %29 : vector<8x8xi32> to vector<8x8xf32>
      %cst_15 = arith.constant dense<0.000000e+00> : vector<8x128xf32>
      %31 = tpu.matmul %30, %19, %cst_15 {dimension_numbers = #tpu.dot_dimension_numbers<[1], [0], [0], [1], [0, 0, 1, 1], [], []>} : vector<8x8xf32>, vector<8x128xf32>, vector<8x128xf32> -> vector<8x128xf32>
      %32 = vector.extract_strided_slice %31 {offsets = [0, 0], sizes = [2, 128], strides = [1, 1]} : vector<8x128xf32> to vector<2x128xf32>
      %c0_16 = arith.constant 0 : index
      %c0_17 = arith.constant 0 : index
      %33 = vector.load %arg4[%c0_16, %c0_17] : memref<2x128xf32, #tpu.memory_space<vmem>>, vector<2x128xf32>
      tpu.vector_store %arg4[%c0_16, %c0_17], %32 {strides = array<i32>} : memref<2x128xf32, #tpu.memory_space<vmem>>, vector<2x128xf32>,
      %cst_18 = arith.constant 0.000000e+00 : f32
      %34 = vector.broadcast %cst_18 : f32 to vector<2x128xf32>
      %c0_19 = arith.constant 0 : index
      %c0_20 = arith.constant 0 : index
      %35 = vector.load %arg5[%c0_19, %c0_20] : memref<2x128xf32, #tpu.memory_space<vmem>>, vector<2x128xf32>
      tpu.vector_store %arg5[%c0_19, %c0_20], %34 {strides = array<i32>} : memref<2x128xf32, #tpu.memory_space<vmem>>, vector<2x128xf32>,
    } else {
    }
    return
  }
  func.func @transform_0(%arg0: i32, %arg1: i32) -> (i32, i32) {
    %c0_i32 = arith.constant 0 : i32
    return %arg0, %arg1 : i32, i32
  }
  func.func @transform_1(%arg0: i32, %arg1: i32) -> (i32, i32) {
    %c0_i32 = arith.constant 0 : i32
    %c0_i32_0 = arith.constant 0 : i32
    return %arg0, %c0_i32 : i32, i32
  }
  func.func @transform_2(%arg0: i32, %arg1: i32) -> (i32, i32) {
    %c0_i32 = arith.constant 0 : i32
    %c0_i32_0 = arith.constant 0 : i32
    return %arg0, %c0_i32 : i32, i32
  }
  func.func @transform_3(%arg0: i32, %arg1: i32) -> (i32, i32) {
    %c0_i32 = arith.constant 0 : i32
    %c0_i32_0 = arith.constant 0 : i32
    return %arg0, %c0_i32 : i32, i32
  }
}

</mosaic_0001>

<bundles_post_ra>
// kernel: tpu_custom_call.1
= control target key start
LH: loop header
LB: loop body
LE: loop exit
PB: predicated region body
PF: predicated region fallthrough
CT: control target
= control target key end

     0   :  { %9 = vsyncpa [#allocation4], 0  ;;  %s317_s0 = inlined_call_operand.hbm [shape: f32[8,256], index: 0, kind: input, shape index: {}]   ;;  %s318_s1 = inlined_call_operand.hbm [shape: f32[8,128], index: 1, kind: input, shape index: {}]   ;;  %s319_s2 = inlined_call_operand.hbm [shape: f32[2,128], index: 2, kind: output, shape index: {0}]   ;;  %s320_s3 = inlined_call_operand.hbm [shape: f32[2,128], index: 3, kind: output, shape index: {1}]  }
   0x1   :  { %10 = vsyncpa [#allocation7], 0 }
   0x2   :  { %11 = vsyncpa [#allocation5], 0 }
   0x3   :  { %12 = vsyncpa [#allocation10], 0  ;;  %s279_s12 = smov [#allocation3]   ;;  %s280_s14 = smov [#allocation6]  }
   0x4   :  { %s19_s13 = sshll.u32 %s279_s12, 4  ;;  %s29_s15 = sshll.u32 %s280_s14, 4  ;;  %s20_s13 = int_to_ptr.vmem [resolvable:$true] %s19_s13  ;;  %s30_s15 = int_to_ptr.vmem [resolvable:$true] %s29_s15 }
   0x5   :  { %s199_s16 = scalar_lea.vmem %s20_s13, 256  ;;  %p204_p1 = scmp.lt.s32.totalorder %s20_s13, %s20_s13 }
   0x6   :  { %p200_p0 = scmp.ne.s32.totalorder %s20_s13, %s199_s16  ;;  %p205_p2 = scmp.lt.s32.totalorder %s199_s16, %s199_s16 }
   0x8   :  { %p206_p3 = por %p205_p2, %p204_p1 }
   0xa   :  { %p207_p4 = pnand %p206_p3, %p200_p0 }
   0xc   :  { %210 = shalt.err (!%p207_p4)
}
   0xd   :  { %22 = dma.hbm_to_vmem [thread:$0]  %s317_s0, 256, %s20_s13, [#allocation4]  }
   0xe   :  { %s219_s19 = scalar_lea.vmem %s30_s15, 128  ;;  %p224_p6 = scmp.lt.s32.totalorder %s30_s15, %s30_s15 }
   0xf   :  { %p220_p5 = scmp.ne.s32.totalorder %s30_s15, %s219_s19  ;;  %p225_p7 = scmp.lt.s32.totalorder %s219_s19, %s219_s19 }
  0x11   :  { %p226_p8 = por %p225_p7, %p224_p6 }
  0x13   :  { %p227_p9 = pnand %p226_p8, %p220_p5 }
  0x15   :  { %230 = shalt.err (!%p227_p9)
}
  0x16   :  { %32 = dma.hbm_to_vmem [thread:$0]  %s318_s1, 128, %s30_s15, [#allocation7]  }
  0x17   :  { %271 = dma.done.wait [#allocation4], 256  }
  0x18   :  { %272 = vsyncadd [#allocation4], 4294967040 }
  0x19   :  { %273 = dma.done.wait [#allocation7], 128  }
  0x1a   :  { %274 = vsyncadd [#allocation7], 4294967168  ;;  %v44_v0 = vld [vmem:[#allocation3] sm:$0xff]  ;;  %v45_v1 = vld [vmem:[#allocation3 + $0x8] sm:$0xff]  ;;  %v281_v3 = vmov 0.0   ;;  %vm282_vm0 = vmmov 0   ;;  %v59_v4 = vlaneseq }
  0x1b   :  { %v46_v2 = vadd.f32 %v45_v1, %v44_v0  ;;  %180 = vmatprep.subr.mxu0 %v281_v3  ;;  %145 = vst [vmem:[#allocation9] sm:$0x3] %v281_v3  ;;  %182 = vmatprep.mubr.msk.f32.mxu0 %vm282_vm0, %v281_v3  ;;  %v57_v10 = vld [vmem:[#allocation6] sm:$0xff]  ;;  %vm70_vm4 = vcmask 64512   ;;  %s283_s0 = smov [#allocation9]  }
  0x1c   :  { %v62_v5 = vshrl.u32 %v59_v4, 7  ;;  %v60_v7 = vand.u32 127, %v59_v4  ;;  %s162_s1 = sshll.u32 %s283_s0, 4  ;;  %s163_s1 = int_to_ptr.vmem [resolvable:$true] %s162_s1 }
  0x1d   :  { %54 = vadd.xlane.f32.xlu0 %v46_v2  ;;  %s231_s22 = scalar_lea.vmem %s163_s1, 32  ;;  %p236_p11 = scmp.lt.s32.totalorder %s163_s1, %s163_s1 }
  0x1e   :  { %v63_v6 = vmul.u32 4, %v62_v5  ;;  %p232_p10 = scmp.ne.s32.totalorder %s163_s1, %s231_s22  ;;  %p237_p12 = scmp.lt.s32.totalorder %s231_s22, %s231_s22 }
  0x20   :  { %v65_v8 = vadd.s32 4, %v63_v6  ;;  %vm64_vm1 = vcmp.ge.s32.totalorder %v60_v7, %v63_v6  ;;  %p238_p13 = por %p237_p12, %p236_p11 }
  0x22   :  { %vm66_vm2 = vcmp.lt.s32.totalorder %v60_v7, %v65_v8  ;;  %p239_p0 = pnand %p238_p13, %p232_p10 }
  0x23   :  { %vm67_vm3 = vmand %vm64_vm1, %vm66_vm2 }
  0x24   :  { %v176_v13 = vsel %vm67_vm3, 1.0, %v281_v3 }
  0xa6   :  { %v55_v9 = vpop.xlane.xlu0 %54 }
  0xa7   :  { %v56_v11 = vmul.f32 0.00390625, %v55_v9 }
  0xa9   :  { %v58_v12 = vmul.f32 %v57_v10, %v56_v11 }
  0xab   :  { %181 = vmatpush3.msra.mxu0 %v58_v12 }
  0xac   :  { %183 = vmatmul.mubr.msk.f32.vlgmr.msra.gmra.mxu0 %vm70_vm4, %v176_v13 }
  0xad   :  { %242 = shalt.err (!%p239_p0)
}
  0xae   :  { %165 = dma.vmem_to_hbm [thread:$0]  %s163_s1, 32, %s320_s3, [#allocation10]  }
  0xaf   :  { %s284_s25 = smov [#allocation8]  }
  0xb0   :  { %s152_s26 = sshll.u32 %s284_s25, 4  ;;  %s153_s26 = int_to_ptr.vmem [resolvable:$true] %s152_s26 }
  0xb1   :  { %s251_s27 = scalar_lea.vmem %s153_s26, 32  ;;  %p256_p2 = scmp.lt.s32.totalorder %s153_s26, %s153_s26 }
  0xb2   :  { %p252_p1 = scmp.ne.s32.totalorder %s153_s26, %s251_s27  ;;  %p257_p3 = scmp.lt.s32.totalorder %s251_s27, %s251_s27 }
  0xb4   :  { %p258_p4 = por %p257_p3, %p256_p2 }
  0xb6   :  { %p259_p5 = pnand %p258_p4, %p252_p1 }
 0x16c   :  { %v140_v14 = vpop.f32.mrf.mxu0 }
 0x16d   :  { %144 = vst [vmem:[#allocation8] sm:$0x3] %v140_v14 }
 0x16e   :  { %v184_v15 = vpop.f32.mrf.mxu0 }
 0x16f   :  { %262 = shalt.err (!%p259_p5)
}
 0x170   :  { %155 = dma.vmem_to_hbm [thread:$0]  %s153_s26, 32, %s319_s2, [#allocation5]  }
 0x171   :  { %275 = dma.done.wait [#allocation5], 32  }
 0x172   :  { %276 = vsyncadd [#allocation5], 4294967264 }
 0x173   :  { %277 = dma.done.wait [#allocation10], 32  }
 0x174   :  { %278 = vsyncadd [#allocation10], 4294967264 }
 0x175   :  { %172 = vsyncpa [#allocation4], 1 }
 0x176   :  { %173 = vsyncpa [#allocation7], 1 }
 0x177   :  { %174 = vsyncpa [#allocation5], 1 }
 0x178   :  { %175 = vsyncpa [#allocation10], 1 }

</bundles_post_ra>
